<compile_context>
chip_gen: v5e
topology: v5e:2x2
jax: 0.10.0
libtpu: 0.0.40
codegen_flags: <defaults>
</compile_context>

<pallas_src>
import functools

import jax
import jax.numpy as jnp
from jax.experimental import pallas as pl
from jax.experimental.pallas import tpu as pltpu


def _round_up(x, m):
    return (x + m - 1) // m * m


def _split_bf16(x):
    """Split f32 `x` into bf16 (hi, lo) halves stacked along the sublane axis.

    hi + lo reconstructs x to ~2^-17 relative error, so a bf16 MXU matmul of the
    stacked [2Q, ...] operand (with f32 accumulation) recovers near-f32 precision
    while the big 0/1 RHS operands stay bf16.  The extra M rows (8 -> 16) sit in
    otherwise-idle rows of the 128/256-row systolic array, so they are free here.
    """
    hi = x.astype(jnp.bfloat16)
    lo = (x - hi.astype(jnp.float32)).astype(jnp.bfloat16)
    return jnp.concatenate([hi, lo], axis=0)


def bpnet_kernel(cavT_ref, CT_ref, BT_ref, A1T_ref, P_ref, fieldT_ref,
                 outT_ref, *, depth, eps):
    """Runs `depth` Bplayer iterations + log_softmax in lane-transposed layout.

    Shapes (Q on sublanes; padded big dims Ep/Np on the 128-lane axis):
      cavT_ref   [Q, Ep]  f32    cav_ij^T (zero-padded)
      CT_ref     [Q, Q]   f32    C^T
      BT_ref     [Ep, Np] bf16   B_^T  (0/1 incidence, exact in bf16)
      A1T_ref    [Np, Ep] bf16   A1^T  (0/1 incidence, exact in bf16)
      P_ref      [Ep, Ep] bf16   one-hot permutation: P[i, e] = (i == indice_ij[e])
      fieldT_ref [Q, Np]  f32    field_i^T (zero-padded)
      outT_ref   [Q, Np]  f32    log_softmax(marg_i, dim=1)^T (padded cols junk)
    """
    Q = CT_ref.shape[0]

    cavT = cavT_ref[...]          # [Q, Ep]  f32
    CT = CT_ref[...]              # [Q, Q]   f32
    BT = BT_ref[...]              # [Ep, Np] bf16  (no in-kernel f32 upcast)
    A1T = A1T_ref[...]            # [Np, Ep] bf16
    P = P_ref[...]                # [Ep, Ep] bf16
    fieldT = fieldT_ref[...]      # [Q, Np]  f32

    margT = fieldT                # overwritten on the first iteration (depth >= 1)

    # depth is a small static Python int -> static unroll is fine.
    for _ in range(depth):
        # temp2^T = log(C^T @ cav^T + eps).  Exact f32 on the VPU: at M = K = Q = 8
        # the MXU would be <7% utilized, and f32 here protects the log() argument.
        cavC = jnp.zeros_like(cavT)
        for qp in range(Q):                              # static unroll, Q == 8
            cavC = cavC + CT[:, qp:qp + 1] * cavT[qp:qp + 1, :]
        tempT = jnp.log(cavC + eps)                      # [Q, Ep] f32

        t_hl = _split_bf16(tempT)                        # [2Q, Ep] bf16

        # marg^T = temp2^T @ B_^T + field^T  (bf16 x bf16 -> f32 accumulation).
        mB = jnp.dot(t_hl, BT, preferred_element_type=jnp.float32)    # [2Q, Np]
        margT = mB[:Q] + mB[Q:] + fieldT                               # [Q, Np]

        # temp2[indice_ij]^T as a lane-axis permutation matmul (replaces the old
        # serialized row gather and its two XLU transposes).
        gP = jnp.dot(t_hl, P, preferred_element_type=jnp.float32)      # [2Q, Ep]
        gathT = gP[:Q] + gP[Q:]                                        # [Q, Ep]

        # logits^T = marg^T @ A1^T - temp2[indice_ij]^T
        m_hl = _split_bf16(margT)                                      # [2Q, Np]
        mA = jnp.dot(m_hl, A1T, preferred_element_type=jnp.float32)    # [2Q, Ep]
        logitsT = mA[:Q] + mA[Q:] - gathT                              # [Q, Ep]

        # softmax over Q (sublane axis); all element-wise math in f32 (v5e-safe).
        # The approx reciprocal's per-edge scale error is constant across Q and
        # cancels through softmax / log_softmax shift invariance.
        mx = jnp.max(logitsT, axis=0, keepdims=True)                   # [1, Ep]
        p = jnp.exp(logitsT - mx)
        den = jnp.sum(p, axis=0, keepdims=True)                        # [1, Ep]
        cavT = p * pl.reciprocal(den, approx=True)

    # log_softmax(marg_i, dim=1) -> over the sublane (Q) axis in this layout.
    mx2 = jnp.max(margT, axis=0, keepdims=True)
    shifted = margT - mx2
    lse = jnp.log(jnp.sum(jnp.exp(shifted), axis=0, keepdims=True))
    outT_ref[...] = (shifted - lse).astype(outT_ref.dtype)


def bpnet_forward(marg_i, cav_ij, C, B_, A1, indice_ij, field_i,
                  *, depth=3, eps=1e-6):
    if depth == 0:
        # marg_i is only used when there are zero Bplayer iterations.
        return jax.nn.log_softmax(marg_i.astype(jnp.float32), axis=1)

    E, Q = cav_ij.shape
    N = field_i.shape[0]
    Ep = _round_up(E, 128)
    Np = _round_up(N, 128)

    f32, bf16 = jnp.float32, jnp.bfloat16

    # Plain-JAX glue: lane-transposed layout, lane dims zero-padded to multiples
    # of 128 (lane-dense loads/stores), bf16 storage for the 0/1 operators.
    cavT = jnp.pad(cav_ij.T.astype(f32), ((0, 0), (0, Ep - E)))        # [Q, Ep]
    CT = C.T.astype(f32)                                               # [Q, Q]
    BT = jnp.pad(B_.T, ((0, Ep - E), (0, Np - N))).astype(bf16)        # [Ep, Np]
    A1T = jnp.pad(A1.T, ((0, Np - N), (0, Ep - E))).astype(bf16)       # [Np, Ep]
    fieldT = jnp.pad(field_i.T.astype(f32), ((0, 0), (0, Np - N)))     # [Q, Np]
    # One-hot permutation for the gather: P[i, e] = (i == indice_ij[e]).
    # Exact in bf16 (0/1 entries); padded rows/cols are zero so no leakage.
    P = (jnp.arange(E)[:, None] == indice_ij[None, :].astype(jnp.int32))
    P = jnp.pad(P, ((0, Ep - E), (0, Ep - E))).astype(bf16)            # [Ep, Ep]

    kernel = functools.partial(bpnet_kernel, depth=depth, eps=eps)

    flops = int(depth * (2 * Q * Q * Ep                 # C contraction (VPU)
                         + 2 * (2 * Q) * Ep * Np        # temp2 @ B^T
                         + 2 * (2 * Q) * Ep * Ep        # permutation gather
                         + 2 * (2 * Q) * Np * Ep))      # marg @ A1^T
    transcendentals = int(depth * (2 * Q * Ep + Ep) + Q * Np + Np)
    bytes_accessed = int(4 * (Q * Ep + Q * Q + 2 * Q * Np)     # f32 in/out
                         + 2 * (Ep * Np + Np * Ep + Ep * Ep))  # bf16 operands

    vmem = pl.BlockSpec(memory_space=pltpu.MemorySpace.VMEM)

    outT = pl.pallas_call(
        kernel,
        out_shape=jax.ShapeDtypeStruct((Q, Np), jnp.float32),
        in_specs=[vmem] * 6,
        out_specs=vmem,
        compiler_params=pltpu.CompilerParams(
            # Toy shapes need < 1 MiB; cap stays inside v7x's 64 MiB/TC budget.
            # TODO(synk): re-derive per generation once gridded (see header).
            vmem_limit_bytes=48 * 1024 * 1024),
        cost_estimate=pl.CostEstimate(flops=flops,
                                      transcendentals=transcendentals,
                                      bytes_accessed=bytes_accessed),
    )(cavT, CT, BT, A1T, P, fieldT)

    return outT[:, :N].T                                # back to [N, Q]


def bpnet_reference(marg_i, cav_ij, C, B_, A1, indice_ij, field_i,
                    *, depth=3, eps=1e-6):
    """Pure-JAX reference mirroring the PyTorch f32 semantics.

    precision=HIGHEST keeps the reference matmuls truly f32 (XLA's DEFAULT f32
    dot precision on TPU may use single-pass bf16).
    """
    hp = jax.lax.Precision.HIGHEST
    for _ in range(depth):
        temp2 = jnp.log(jnp.dot(cav_ij, C, precision=hp) + eps)
        marg_i = jnp.dot(B_, temp2, precision=hp) + field_i
        cav_ij = jax.nn.softmax(
            jnp.dot(A1, marg_i, precision=hp) - temp2[indice_ij], axis=1)
    return jax.nn.log_softmax(marg_i, axis=1)


if __name__ == "__main__":
    # Small shapes consistent with the module:
    #   N nodes, E directed edges, Q states per variable.
    N, E, Q = 16, 32, 8
    depth, eps = 3, 1e-6

    key = jax.random.PRNGKey(0)
    k_cav, k_marg, k_C, k_B, k_A, k_perm, k_field = jax.random.split(key, 7)

    # cav_ij: row-stochastic messages (softmax output in the real model).
    cav_ij = jax.nn.softmax(jax.random.normal(k_cav, (E, Q)), axis=1).astype(jnp.float32)
    # marg_i: arbitrary init (overwritten on the first layer, same as PyTorch).
    marg_i = jax.random.normal(k_marg, (N, Q)).astype(jnp.float32)
    # C: positive coupling matrix so log(cav @ C + eps) is well-defined.
    C = jnp.exp(jax.random.normal(k_C, (Q, Q)) * 0.5).astype(jnp.float32)
    # Dense stand-ins for the sparse incidence operators B_ [N,E] and A1 [E,N].
    B_ = (jax.random.uniform(k_B, (N, E)) < 0.25).astype(jnp.float32)
    A1 = (jax.random.uniform(k_A, (E, N)) < 0.25).astype(jnp.float32)
    # indice_ij: reverse-edge index (a permutation of the edges).
    indice_ij = jax.random.permutation(k_perm, E).astype(jnp.int32)
    # field_i: local fields.
    field_i = (0.1 * jax.random.normal(k_field, (N, Q))).astype(jnp.float32)

    out = bpnet_forward(marg_i, cav_ij, C, B_, A1, indice_ij, field_i,
                        depth=depth, eps=eps)
    out = jax.block_until_ready(out)

    ref = bpnet_reference(marg_i, cav_ij, C, B_, A1, indice_ij, field_i,
                          depth=depth, eps=eps)
    assert out.shape == (N, Q)
    assert bool(jnp.all(jnp.isfinite(out)))
    # The bf16 hi/lo MXU operands reconstruct f32 to ~2^-17 relative error, so
    # the deviation from the f32 reference stays ~1e-4 after depth=3 iterations;
    # 5e-3 leaves an order of magnitude of margin.
    assert bool(jnp.allclose(out, ref, rtol=5e-3, atol=5e-3))
    print("KERNEL_OK")
</pallas_src>

<mosaic_0001>
module attributes {stable_mosaic.version = 11 : i64} {
  func.func @bpnet_kernel(%arg0: memref<8x128xf32, #tpu.memory_space<vmem>>, %arg1: memref<8x8xf32, #tpu.memory_space<vmem>>, %arg2: memref<128x128xbf16, #tpu.memory_space<vmem>>, %arg3: memref<128x128xbf16, #tpu.memory_space<vmem>>, %arg4: memref<128x128xbf16, #tpu.memory_space<vmem>>, %arg5: memref<8x128xf32, #tpu.memory_space<vmem>>, %arg6: memref<8x128xf32, #tpu.memory_space<vmem>>) attributes {dimension_semantics = [], scalar_prefetch = 0 : i64, scratch_operands = 0 : i64, tpu.core_type = #tpu.core_type<tc>} {
    %c0 = arith.constant 0 : index
    %c0_0 = arith.constant 0 : index
    %0 = vector.load %arg0[%c0, %c0_0] : memref<8x128xf32, #tpu.memory_space<vmem>>, vector<8x128xf32>
    %c0_1 = arith.constant 0 : index
    %c0_2 = arith.constant 0 : index
    %1 = vector.load %arg1[%c0_1, %c0_2] : memref<8x8xf32, #tpu.memory_space<vmem>>, vector<8x8xf32>
    %c0_3 = arith.constant 0 : index
    %c0_4 = arith.constant 0 : index
    %2 = vector.load %arg2[%c0_3, %c0_4] : memref<128x128xbf16, #tpu.memory_space<vmem>>, vector<128x128xbf16>
    %c0_5 = arith.constant 0 : index
    %c0_6 = arith.constant 0 : index
    %3 = vector.load %arg3[%c0_5, %c0_6] : memref<128x128xbf16, #tpu.memory_space<vmem>>, vector<128x128xbf16>
    %c0_7 = arith.constant 0 : index
    %c0_8 = arith.constant 0 : index
    %4 = vector.load %arg4[%c0_7, %c0_8] : memref<128x128xbf16, #tpu.memory_space<vmem>>, vector<128x128xbf16>
    %c0_9 = arith.constant 0 : index
    %c0_10 = arith.constant 0 : index
    %5 = vector.load %arg5[%c0_9, %c0_10] : memref<8x128xf32, #tpu.memory_space<vmem>>, vector<8x128xf32>
    %cst = arith.constant 0.000000e+00 : f32
    %6 = vector.broadcast %cst : f32 to vector<8x128xf32>
    %7 = vector.extract_strided_slice %1 {offsets = [0, 0], sizes = [8, 1], strides = [1, 1]} : vector<8x8xf32> to vector<8x1xf32>
    %8 = vector.extract_strided_slice %0 {offsets = [0, 0], sizes = [1, 128], strides = [1, 1]} : vector<8x128xf32> to vector<1x128xf32>
    %9 = vector.broadcast %7 : vector<8x1xf32> to vector<8x128xf32>
    %10 = vector.broadcast %8 : vector<1x128xf32> to vector<8x128xf32>
    %11 = arith.mulf %9, %10 : vector<8x128xf32>
    %12 = arith.addf %6, %11 : vector<8x128xf32>
    %13 = vector.extract_strided_slice %1 {offsets = [0, 1], sizes = [8, 1], strides = [1, 1]} : vector<8x8xf32> to vector<8x1xf32>
    %14 = vector.extract_strided_slice %0 {offsets = [1, 0], sizes = [1, 128], strides = [1, 1]} : vector<8x128xf32> to vector<1x128xf32>
    %15 = vector.broadcast %13 : vector<8x1xf32> to vector<8x128xf32>
    %16 = vector.broadcast %14 : vector<1x128xf32> to vector<8x128xf32>
    %17 = arith.mulf %15, %16 : vector<8x128xf32>
    %18 = arith.addf %12, %17 : vector<8x128xf32>
    %19 = vector.extract_strided_slice %1 {offsets = [0, 2], sizes = [8, 1], strides = [1, 1]} : vector<8x8xf32> to vector<8x1xf32>
    %20 = vector.extract_strided_slice %0 {offsets = [2, 0], sizes = [1, 128], strides = [1, 1]} : vector<8x128xf32> to vector<1x128xf32>
    %21 = vector.broadcast %19 : vector<8x1xf32> to vector<8x128xf32>
    %22 = vector.broadcast %20 : vector<1x128xf32> to vector<8x128xf32>
    %23 = arith.mulf %21, %22 : vector<8x128xf32>
    %24 = arith.addf %18, %23 : vector<8x128xf32>
    %25 = vector.extract_strided_slice %1 {offsets = [0, 3], sizes = [8, 1], strides = [1, 1]} : vector<8x8xf32> to vector<8x1xf32>
    %26 = vector.extract_strided_slice %0 {offsets = [3, 0], sizes = [1, 128], strides = [1, 1]} : vector<8x128xf32> to vector<1x128xf32>
    %27 = vector.broadcast %25 : vector<8x1xf32> to vector<8x128xf32>
    %28 = vector.broadcast %26 : vector<1x128xf32> to vector<8x128xf32>
    %29 = arith.mulf %27, %28 : vector<8x128xf32>
    %30 = arith.addf %24, %29 : vector<8x128xf32>
    %31 = vector.extract_strided_slice %1 {offsets = [0, 4], sizes = [8, 1], strides = [1, 1]} : vector<8x8xf32> to vector<8x1xf32>
    %32 = vector.extract_strided_slice %0 {offsets = [4, 0], sizes = [1, 128], strides = [1, 1]} : vector<8x128xf32> to vector<1x128xf32>
    %33 = vector.broadcast %31 : vector<8x1xf32> to vector<8x128xf32>
    %34 = vector.broadcast %32 : vector<1x128xf32> to vector<8x128xf32>
    %35 = arith.mulf %33, %34 : vector<8x128xf32>
    %36 = arith.addf %30, %35 : vector<8x128xf32>
    %37 = vector.extract_strided_slice %1 {offsets = [0, 5], sizes = [8, 1], strides = [1, 1]} : vector<8x8xf32> to vector<8x1xf32>
    %38 = vector.extract_strided_slice %0 {offsets = [5, 0], sizes = [1, 128], strides = [1, 1]} : vector<8x128xf32> to vector<1x128xf32>
    %39 = vector.broadcast %37 : vector<8x1xf32> to vector<8x128xf32>
    %40 = vector.broadcast %38 : vector<1x128xf32> to vector<8x128xf32>
    %41 = arith.mulf %39, %40 : vector<8x128xf32>
    %42 = arith.addf %36, %41 : vector<8x128xf32>
    %43 = vector.extract_strided_slice %1 {offsets = [0, 6], sizes = [8, 1], strides = [1, 1]} : vector<8x8xf32> to vector<8x1xf32>
    %44 = vector.extract_strided_slice %0 {offsets = [6, 0], sizes = [1, 128], strides = [1, 1]} : vector<8x128xf32> to vector<1x128xf32>
    %45 = vector.broadcast %43 : vector<8x1xf32> to vector<8x128xf32>
    %46 = vector.broadcast %44 : vector<1x128xf32> to vector<8x128xf32>
    %47 = arith.mulf %45, %46 : vector<8x128xf32>
    %48 = arith.addf %42, %47 : vector<8x128xf32>
    %49 = vector.extract_strided_slice %1 {offsets = [0, 7], sizes = [8, 1], strides = [1, 1]} : vector<8x8xf32> to vector<8x1xf32>
    %50 = vector.extract_strided_slice %0 {offsets = [7, 0], sizes = [1, 128], strides = [1, 1]} : vector<8x128xf32> to vector<1x128xf32>
    %51 = vector.broadcast %49 : vector<8x1xf32> to vector<8x128xf32>
    %52 = vector.broadcast %50 : vector<1x128xf32> to vector<8x128xf32>
    %53 = arith.mulf %51, %52 : vector<8x128xf32>
    %54 = arith.addf %48, %53 : vector<8x128xf32>
    %cst_11 = arith.constant 9.99999997E-7 : f32
    %55 = vector.broadcast %cst_11 : f32 to vector<8x128xf32>
    %56 = arith.addf %54, %55 : vector<8x128xf32>
    %57 = math.log %56 : vector<8x128xf32>
    %58 = arith.truncf %57 : vector<8x128xf32> to vector<8x128xbf16>
    %59 = arith.extf %58 : vector<8x128xbf16> to vector<8x128xf32>
    %60 = arith.subf %57, %59 : vector<8x128xf32>
    %61 = arith.truncf %60 : vector<8x128xf32> to vector<8x128xbf16>
    %62 = tpu.concatenate %58, %61 in 0 : vector<8x128xbf16>, vector<8x128xbf16> -> vector<16x128xbf16>
    %cst_12 = arith.constant dense<0.000000e+00> : vector<16x128xf32>
    %63 = tpu.matmul %62, %2, %cst_12 {dimension_numbers = #tpu.dot_dimension_numbers<[1], [0], [0], [1], [0, 0, 1, 1], [], []>} : vector<16x128xbf16>, vector<128x128xbf16>, vector<16x128xf32> -> vector<16x128xf32>
    %64 = vector.extract_strided_slice %63 {offsets = [0, 0], sizes = [8, 128], strides = [1, 1]} : vector<16x128xf32> to vector<8x128xf32>
    %65 = vector.extract_strided_slice %63 {offsets = [8, 0], sizes = [8, 128], strides = [1, 1]} : vector<16x128xf32> to vector<8x128xf32>
    %66 = arith.addf %64, %65 : vector<8x128xf32>
    %67 = arith.addf %66, %5 : vector<8x128xf32>
    %cst_13 = arith.constant dense<0.000000e+00> : vector<16x128xf32>
    %68 = tpu.matmul %62, %4, %cst_13 {dimension_numbers = #tpu.dot_dimension_numbers<[1], [0], [0], [1], [0, 0, 1, 1], [], []>} : vector<16x128xbf16>, vector<128x128xbf16>, vector<16x128xf32> -> vector<16x128xf32>
    %69 = vector.extract_strided_slice %68 {offsets = [0, 0], sizes = [8, 128], strides = [1, 1]} : vector<16x128xf32> to vector<8x128xf32>
    %70 = vector.extract_strided_slice %68 {offsets = [8, 0], sizes = [8, 128], strides = [1, 1]} : vector<16x128xf32> to vector<8x128xf32>
    %71 = arith.addf %69, %70 : vector<8x128xf32>
    %72 = arith.truncf %67 : vector<8x128xf32> to vector<8x128xbf16>
    %73 = arith.extf %72 : vector<8x128xbf16> to vector<8x128xf32>
    %74 = arith.subf %67, %73 : vector<8x128xf32>
    %75 = arith.truncf %74 : vector<8x128xf32> to vector<8x128xbf16>
    %76 = tpu.concatenate %72, %75 in 0 : vector<8x128xbf16>, vector<8x128xbf16> -> vector<16x128xbf16>
    %cst_14 = arith.constant dense<0.000000e+00> : vector<16x128xf32>
    %77 = tpu.matmul %76, %3, %cst_14 {dimension_numbers = #tpu.dot_dimension_numbers<[1], [0], [0], [1], [0, 0, 1, 1], [], []>} : vector<16x128xbf16>, vector<128x128xbf16>, vector<16x128xf32> -> vector<16x128xf32>
    %78 = vector.extract_strided_slice %77 {offsets = [0, 0], sizes = [8, 128], strides = [1, 1]} : vector<16x128xf32> to vector<8x128xf32>
    %79 = vector.extract_strided_slice %77 {offsets = [8, 0], sizes = [8, 128], strides = [1, 1]} : vector<16x128xf32> to vector<8x128xf32>
    %80 = arith.addf %78, %79 : vector<8x128xf32>
    %81 = arith.subf %80, %71 : vector<8x128xf32>
    %cst_15 = arith.constant dense<0xFF800000> : vector<128xf32>
    %82 = vector.multi_reduction <maximumf>, %81, %cst_15 [0] : vector<8x128xf32> to vector<128xf32>
    %83 = vector.shape_cast %82 : vector<128xf32> to vector<1x128xf32>
    %84 = vector.broadcast %83 : vector<1x128xf32> to vector<8x128xf32>
    %85 = arith.subf %81, %84 : vector<8x128xf32>
    %86 = math.exp %85 : vector<8x128xf32>
    %cst_16 = arith.constant dense<0.000000e+00> : vector<128xf32>
    %87 = vector.multi_reduction <add>, %86, %cst_16 [0] : vector<8x128xf32> to vector<128xf32>
    %88 = vector.shape_cast %87 : vector<128xf32> to vector<1x128xf32>
    %89 = tpu.reciprocal %88 {approx = true} : vector<1x128xf32> -> vector<1x128xf32>
    %90 = vector.broadcast %89 : vector<1x128xf32> to vector<8x128xf32>
    %91 = arith.mulf %86, %90 : vector<8x128xf32>
    %cst_17 = arith.constant 0.000000e+00 : f32
    %92 = vector.broadcast %cst_17 : f32 to vector<8x128xf32>
    %93 = vector.extract_strided_slice %1 {offsets = [0, 0], sizes = [8, 1], strides = [1, 1]} : vector<8x8xf32> to vector<8x1xf32>
    %94 = vector.extract_strided_slice %91 {offsets = [0, 0], sizes = [1, 128], strides = [1, 1]} : vector<8x128xf32> to vector<1x128xf32>
    %95 = vector.broadcast %93 : vector<8x1xf32> to vector<8x128xf32>
    %96 = vector.broadcast %94 : vector<1x128xf32> to vector<8x128xf32>
    %97 = arith.mulf %95, %96 : vector<8x128xf32>
    %98 = arith.addf %92, %97 : vector<8x128xf32>
    %99 = vector.extract_strided_slice %1 {offsets = [0, 1], sizes = [8, 1], strides = [1, 1]} : vector<8x8xf32> to vector<8x1xf32>
    %100 = vector.extract_strided_slice %91 {offsets = [1, 0], sizes = [1, 128], strides = [1, 1]} : vector<8x128xf32> to vector<1x128xf32>
    %101 = vector.broadcast %99 : vector<8x1xf32> to vector<8x128xf32>
    %102 = vector.broadcast %100 : vector<1x128xf32> to vector<8x128xf32>
    %103 = arith.mulf %101, %102 : vector<8x128xf32>
    %104 = arith.addf %98, %103 : vector<8x128xf32>
    %105 = vector.extract_strided_slice %1 {offsets = [0, 2], sizes = [8, 1], strides = [1, 1]} : vector<8x8xf32> to vector<8x1xf32>
    %106 = vector.extract_strided_slice %91 {offsets = [2, 0], sizes = [1, 128], strides = [1, 1]} : vector<8x128xf32> to vector<1x128xf32>
    %107 = vector.broadcast %105 : vector<8x1xf32> to vector<8x128xf32>
    %108 = vector.broadcast %106 : vector<1x128xf32> to vector<8x128xf32>
    %109 = arith.mulf %107, %108 : vector<8x128xf32>
    %110 = arith.addf %104, %109 : vector<8x128xf32>
    %111 = vector.extract_strided_slice %1 {offsets = [0, 3], sizes = [8, 1], strides = [1, 1]} : vector<8x8xf32> to vector<8x1xf32>
    %112 = vector.extract_strided_slice %91 {offsets = [3, 0], sizes = [1, 128], strides = [1, 1]} : vector<8x128xf32> to vector<1x128xf32>
    %113 = vector.broadcast %111 : vector<8x1xf32> to vector<8x128xf32>
    %114 = vector.broadcast %112 : vector<1x128xf32> to vector<8x128xf32>
    %115 = arith.mulf %113, %114 : vector<8x128xf32>
    %116 = arith.addf %110, %115 : vector<8x128xf32>
    %117 = vector.extract_strided_slice %1 {offsets = [0, 4], sizes = [8, 1], strides = [1, 1]} : vector<8x8xf32> to vector<8x1xf32>
    %118 = vector.extract_strided_slice %91 {offsets = [4, 0], sizes = [1, 128], strides = [1, 1]} : vector<8x128xf32> to vector<1x128xf32>
    %119 = vector.broadcast %117 : vector<8x1xf32> to vector<8x128xf32>
    %120 = vector.broadcast %118 : vector<1x128xf32> to vector<8x128xf32>
    %121 = arith.mulf %119, %120 : vector<8x128xf32>
    %122 = arith.addf %116, %121 : vector<8x128xf32>
    %123 = vector.extract_strided_slice %1 {offsets = [0, 5], sizes = [8, 1], strides = [1, 1]} : vector<8x8xf32> to vector<8x1xf32>
    %124 = vector.extract_strided_slice %91 {offsets = [5, 0], sizes = [1, 128], strides = [1, 1]} : vector<8x128xf32> to vector<1x128xf32>
    %125 = vector.broadcast %123 : vector<8x1xf32> to vector<8x128xf32>
    %126 = vector.broadcast %124 : vector<1x128xf32> to vector<8x128xf32>
    %127 = arith.mulf %125, %126 : vector<8x128xf32>
    %128 = arith.addf %122, %127 : vector<8x128xf32>
    %129 = vector.extract_strided_slice %1 {offsets = [0, 6], sizes = [8, 1], strides = [1, 1]} : vector<8x8xf32> to vector<8x1xf32>
    %130 = vector.extract_strided_slice %91 {offsets = [6, 0], sizes = [1, 128], strides = [1, 1]} : vector<8x128xf32> to vector<1x128xf32>
    %131 = vector.broadcast %129 : vector<8x1xf32> to vector<8x128xf32>
    %132 = vector.broadcast %130 : vector<1x128xf32> to vector<8x128xf32>
    %133 = arith.mulf %131, %132 : vector<8x128xf32>
    %134 = arith.addf %128, %133 : vector<8x128xf32>
    %135 = vector.extract_strided_slice %1 {offsets = [0, 7], sizes = [8, 1], strides = [1, 1]} : vector<8x8xf32> to vector<8x1xf32>
    %136 = vector.extract_strided_slice %91 {offsets = [7, 0], sizes = [1, 128], strides = [1, 1]} : vector<8x128xf32> to vector<1x128xf32>
    %137 = vector.broadcast %135 : vector<8x1xf32> to vector<8x128xf32>
    %138 = vector.broadcast %136 : vector<1x128xf32> to vector<8x128xf32>
    %139 = arith.mulf %137, %138 : vector<8x128xf32>
    %140 = arith.addf %134, %139 : vector<8x128xf32>
    %cst_18 = arith.constant 9.99999997E-7 : f32
    %141 = vector.broadcast %cst_18 : f32 to vector<8x128xf32>
    %142 = arith.addf %140, %141 : vector<8x128xf32>
    %143 = math.log %142 : vector<8x128xf32>
    %144 = arith.truncf %143 : vector<8x128xf32> to vector<8x128xbf16>
    %145 = arith.extf %144 : vector<8x128xbf16> to vector<8x128xf32>
    %146 = arith.subf %143, %145 : vector<8x128xf32>
    %147 = arith.truncf %146 : vector<8x128xf32> to vector<8x128xbf16>
    %148 = tpu.concatenate %144, %147 in 0 : vector<8x128xbf16>, vector<8x128xbf16> -> vector<16x128xbf16>
    %cst_19 = arith.constant dense<0.000000e+00> : vector<16x128xf32>
    %149 = tpu.matmul %148, %2, %cst_19 {dimension_numbers = #tpu.dot_dimension_numbers<[1], [0], [0], [1], [0, 0, 1, 1], [], []>} : vector<16x128xbf16>, vector<128x128xbf16>, vector<16x128xf32> -> vector<16x128xf32>
    %150 = vector.extract_strided_slice %149 {offsets = [0, 0], sizes = [8, 128], strides = [1, 1]} : vector<16x128xf32> to vector<8x128xf32>
    %151 = vector.extract_strided_slice %149 {offsets = [8, 0], sizes = [8, 128], strides = [1, 1]} : vector<16x128xf32> to vector<8x128xf32>
    %152 = arith.addf %150, %151 : vector<8x128xf32>
    %153 = arith.addf %152, %5 : vector<8x128xf32>
    %cst_20 = arith.constant dense<0.000000e+00> : vector<16x128xf32>
    %154 = tpu.matmul %148, %4, %cst_20 {dimension_numbers = #tpu.dot_dimension_numbers<[1], [0], [0], [1], [0, 0, 1, 1], [], []>} : vector<16x128xbf16>, vector<128x128xbf16>, vector<16x128xf32> -> vector<16x128xf32>
    %155 = vector.extract_strided_slice %154 {offsets = [0, 0], sizes = [8, 128], strides = [1, 1]} : vector<16x128xf32> to vector<8x128xf32>
    %156 = vector.extract_strided_slice %154 {offsets = [8, 0], sizes = [8, 128], strides = [1, 1]} : vector<16x128xf32> to vector<8x128xf32>
    %157 = arith.addf %155, %156 : vector<8x128xf32>
    %158 = arith.truncf %153 : vector<8x128xf32> to vector<8x128xbf16>
    %159 = arith.extf %158 : vector<8x128xbf16> to vector<8x128xf32>
    %160 = arith.subf %153, %159 : vector<8x128xf32>
    %161 = arith.truncf %160 : vector<8x128xf32> to vector<8x128xbf16>
    %162 = tpu.concatenate %158, %161 in 0 : vector<8x128xbf16>, vector<8x128xbf16> -> vector<16x128xbf16>
    %cst_21 = arith.constant dense<0.000000e+00> : vector<16x128xf32>
    %163 = tpu.matmul %162, %3, %cst_21 {dimension_numbers = #tpu.dot_dimension_numbers<[1], [0], [0], [1], [0, 0, 1, 1], [], []>} : vector<16x128xbf16>, vector<128x128xbf16>, vector<16x128xf32> -> vector<16x128xf32>
    %164 = vector.extract_strided_slice %163 {offsets = [0, 0], sizes = [8, 128], strides = [1, 1]} : vector<16x128xf32> to vector<8x128xf32>
    %165 = vector.extract_strided_slice %163 {offsets = [8, 0], sizes = [8, 128], strides = [1, 1]} : vector<16x128xf32> to vector<8x128xf32>
    %166 = arith.addf %164, %165 : vector<8x128xf32>
    %167 = arith.subf %166, %157 : vector<8x128xf32>
    %cst_22 = arith.constant dense<0xFF800000> : vector<128xf32>
    %168 = vector.multi_reduction <maximumf>, %167, %cst_22 [0] : vector<8x128xf32> to vector<128xf32>
    %169 = vector.shape_cast %168 : vector<128xf32> to vector<1x128xf32>
    %170 = vector.broadcast %169 : vector<1x128xf32> to vector<8x128xf32>
    %171 = arith.subf %167, %170 : vector<8x128xf32>
    %172 = math.exp %171 : vector<8x128xf32>
    %cst_23 = arith.constant dense<0.000000e+00> : vector<128xf32>
    %173 = vector.multi_reduction <add>, %172, %cst_23 [0] : vector<8x128xf32> to vector<128xf32>
    %174 = vector.shape_cast %173 : vector<128xf32> to vector<1x128xf32>
    %175 = tpu.reciprocal %174 {approx = true} : vector<1x128xf32> -> vector<1x128xf32>
    %176 = vector.broadcast %175 : vector<1x128xf32> to vector<8x128xf32>
    %177 = arith.mulf %172, %176 : vector<8x128xf32>
    %cst_24 = arith.constant 0.000000e+00 : f32
    %178 = vector.broadcast %cst_24 : f32 to vector<8x128xf32>
    %179 = vector.extract_strided_slice %1 {offsets = [0, 0], sizes = [8, 1], strides = [1, 1]} : vector<8x8xf32> to vector<8x1xf32>
    %180 = vector.extract_strided_slice %177 {offsets = [0, 0], sizes = [1, 128], strides = [1, 1]} : vector<8x128xf32> to vector<1x128xf32>
    %181 = vector.broadcast %179 : vector<8x1xf32> to vector<8x128xf32>
    %182 = vector.broadcast %180 : vector<1x128xf32> to vector<8x128xf32>
    %183 = arith.mulf %181, %182 : vector<8x128xf32>
    %184 = arith.addf %178, %183 : vector<8x128xf32>
    %185 = vector.extract_strided_slice %1 {offsets = [0, 1], sizes = [8, 1], strides = [1, 1]} : vector<8x8xf32> to vector<8x1xf32>
    %186 = vector.extract_strided_slice %177 {offsets = [1, 0], sizes = [1, 128], strides = [1, 1]} : vector<8x128xf32> to vector<1x128xf32>
    %187 = vector.broadcast %185 : vector<8x1xf32> to vector<8x128xf32>
    %188 = vector.broadcast %186 : vector<1x128xf32> to vector<8x128xf32>
    %189 = arith.mulf %187, %188 : vector<8x128xf32>
    %190 = arith.addf %184, %189 : vector<8x128xf32>
    %191 = vector.extract_strided_slice %1 {offsets = [0, 2], sizes = [8, 1], strides = [1, 1]} : vector<8x8xf32> to vector<8x1xf32>
    %192 = vector.extract_strided_slice %177 {offsets = [2, 0], sizes = [1, 128], strides = [1, 1]} : vector<8x128xf32> to vector<1x128xf32>
    %193 = vector.broadcast %191 : vector<8x1xf32> to vector<8x128xf32>
    %194 = vector.broadcast %192 : vector<1x128xf32> to vector<8x128xf32>
    %195 = arith.mulf %193, %194 : vector<8x128xf32>
    %196 = arith.addf %190, %195 : vector<8x128xf32>
    %197 = vector.extract_strided_slice %1 {offsets = [0, 3], sizes = [8, 1], strides = [1, 1]} : vector<8x8xf32> to vector<8x1xf32>
    %198 = vector.extract_strided_slice %177 {offsets = [3, 0], sizes = [1, 128], strides = [1, 1]} : vector<8x128xf32> to vector<1x128xf32>
    %199 = vector.broadcast %197 : vector<8x1xf32> to vector<8x128xf32>
    %200 = vector.broadcast %198 : vector<1x128xf32> to vector<8x128xf32>
    %201 = arith.mulf %199, %200 : vector<8x128xf32>
    %202 = arith.addf %196, %201 : vector<8x128xf32>
    %203 = vector.extract_strided_slice %1 {offsets = [0, 4], sizes = [8, 1], strides = [1, 1]} : vector<8x8xf32> to vector<8x1xf32>
    %204 = vector.extract_strided_slice %177 {offsets = [4, 0], sizes = [1, 128], strides = [1, 1]} : vector<8x128xf32> to vector<1x128xf32>
    %205 = vector.broadcast %203 : vector<8x1xf32> to vector<8x128xf32>
    %206 = vector.broadcast %204 : vector<1x128xf32> to vector<8x128xf32>
    %207 = arith.mulf %205, %206 : vector<8x128xf32>
    %208 = arith.addf %202, %207 : vector<8x128xf32>
    %209 = vector.extract_strided_slice %1 {offsets = [0, 5], sizes = [8, 1], strides = [1, 1]} : vector<8x8xf32> to vector<8x1xf32>
    %210 = vector.extract_strided_slice %177 {offsets = [5, 0], sizes = [1, 128], strides = [1, 1]} : vector<8x128xf32> to vector<1x128xf32>
    %211 = vector.broadcast %209 : vector<8x1xf32> to vector<8x128xf32>
    %212 = vector.broadcast %210 : vector<1x128xf32> to vector<8x128xf32>
    %213 = arith.mulf %211, %212 : vector<8x128xf32>
    %214 = arith.addf %208, %213 : vector<8x128xf32>
    %215 = vector.extract_strided_slice %1 {offsets = [0, 6], sizes = [8, 1], strides = [1, 1]} : vector<8x8xf32> to vector<8x1xf32>
    %216 = vector.extract_strided_slice %177 {offsets = [6, 0], sizes = [1, 128], strides = [1, 1]} : vector<8x128xf32> to vector<1x128xf32>
    %217 = vector.broadcast %215 : vector<8x1xf32> to vector<8x128xf32>
    %218 = vector.broadcast %216 : vector<1x128xf32> to vector<8x128xf32>
    %219 = arith.mulf %217, %218 : vector<8x128xf32>
    %220 = arith.addf %214, %219 : vector<8x128xf32>
    %221 = vector.extract_strided_slice %1 {offsets = [0, 7], sizes = [8, 1], strides = [1, 1]} : vector<8x8xf32> to vector<8x1xf32>
    %222 = vector.extract_strided_slice %177 {offsets = [7, 0], sizes = [1, 128], strides = [1, 1]} : vector<8x128xf32> to vector<1x128xf32>
    %223 = vector.broadcast %221 : vector<8x1xf32> to vector<8x128xf32>
    %224 = vector.broadcast %222 : vector<1x128xf32> to vector<8x128xf32>
    %225 = arith.mulf %223, %224 : vector<8x128xf32>
    %226 = arith.addf %220, %225 : vector<8x128xf32>
    %cst_25 = arith.constant 9.99999997E-7 : f32
    %227 = vector.broadcast %cst_25 : f32 to vector<8x128xf32>
    %228 = arith.addf %226, %227 : vector<8x128xf32>
    %229 = math.log %228 : vector<8x128xf32>
    %230 = arith.truncf %229 : vector<8x128xf32> to vector<8x128xbf16>
    %231 = arith.extf %230 : vector<8x128xbf16> to vector<8x128xf32>
    %232 = arith.subf %229, %231 : vector<8x128xf32>
    %233 = arith.truncf %232 : vector<8x128xf32> to vector<8x128xbf16>
    %234 = tpu.concatenate %230, %233 in 0 : vector<8x128xbf16>, vector<8x128xbf16> -> vector<16x128xbf16>
    %cst_26 = arith.constant dense<0.000000e+00> : vector<16x128xf32>
    %235 = tpu.matmul %234, %2, %cst_26 {dimension_numbers = #tpu.dot_dimension_numbers<[1], [0], [0], [1], [0, 0, 1, 1], [], []>} : vector<16x128xbf16>, vector<128x128xbf16>, vector<16x128xf32> -> vector<16x128xf32>
    %236 = vector.extract_strided_slice %235 {offsets = [0, 0], sizes = [8, 128], strides = [1, 1]} : vector<16x128xf32> to vector<8x128xf32>
    %237 = vector.extract_strided_slice %235 {offsets = [8, 0], sizes = [8, 128], strides = [1, 1]} : vector<16x128xf32> to vector<8x128xf32>
    %238 = arith.addf %236, %237 : vector<8x128xf32>
    %239 = arith.addf %238, %5 : vector<8x128xf32>
    %cst_27 = arith.constant dense<0xFF800000> : vector<128xf32>
    %240 = vector.multi_reduction <maximumf>, %239, %cst_27 [0] : vector<8x128xf32> to vector<128xf32>
    %241 = vector.shape_cast %240 : vector<128xf32> to vector<1x128xf32>
    %242 = vector.broadcast %241 : vector<1x128xf32> to vector<8x128xf32>
    %243 = arith.subf %239, %242 : vector<8x128xf32>
    %244 = math.exp %243 : vector<8x128xf32>
    %cst_28 = arith.constant dense<0.000000e+00> : vector<128xf32>
    %245 = vector.multi_reduction <add>, %244, %cst_28 [0] : vector<8x128xf32> to vector<128xf32>
    %246 = vector.shape_cast %245 : vector<128xf32> to vector<1x128xf32>
    %247 = math.log %246 : vector<1x128xf32>
    %248 = vector.broadcast %247 : vector<1x128xf32> to vector<8x128xf32>
    %249 = arith.subf %243, %248 : vector<8x128xf32>
    %c0_29 = arith.constant 0 : index
    %c0_30 = arith.constant 0 : index
    %250 = vector.load %arg6[%c0_29, %c0_30] : memref<8x128xf32, #tpu.memory_space<vmem>>, vector<8x128xf32>
    tpu.vector_store %arg6[%c0_29, %c0_30], %249 {strides = array<i32>} : memref<8x128xf32, #tpu.memory_space<vmem>>, vector<8x128xf32>,
    return
  }
}

</mosaic_0001>

<bundles_post_ra>
// kernel: tpu_custom_call.1
= control target key start
LH: loop header
LB: loop body
LE: loop exit
PB: predicated region body
PF: predicated region fallthrough
CT: control target
= control target key end

     0   :  { %11 = vsyncpa [#allocation3], 0  ;;  %s1177_s0 = inlined_call_operand.hbm [shape: f32[8,128], index: 0, kind: input, shape index: {}]   ;;  %s1178_s1 = inlined_call_operand.hbm [shape: f32[8,8], index: 1, kind: input, shape index: {}]   ;;  %s1179_s2 = inlined_call_operand.hbm [shape: bf16[128,128], index: 2, kind: input, shape index: {}]   ;;  %s1180_s3 = inlined_call_operand.hbm [shape: bf16[128,128], index: 3, kind: input, shape index: {}]   ;;  %s1181_s4 = inlined_call_operand.hbm [shape: bf16[128,128], index: 4, kind: input, shape index: {}]   ;;  %s1182_s5 = inlined_call_operand.hbm [shape: f32[8,128], index: 5, kind: input, shape index: {}]   ;;  %s1183_s6 = inlined_call_operand.hbm [shape: f32[8,128], index: 6, kind: output, shape index: {}]  }
   0x1   :  { %12 = vsyncpa [#allocation6], 0 }
   0x2   :  { %13 = vsyncpa [#allocation9], 0 }
   0x3   :  { %14 = vsyncpa [#allocation12], 0  ;;  %s32_s23 = sshll.u32 %s1178_s1, 4  ;;  %s33_s23 = int_to_ptr.hbm [resolvable:$true] %s32_s23 }
   0x4   :  { %15 = vsyncpa [#allocation4], 0  ;;  %s1002_s24 = smov [#allocation5]   ;;  %s55_s28 = sshll.u32 %s1180_s3, 4  ;;  %s56_s28 = int_to_ptr.hbm [resolvable:$true] %s55_s28 }
   0x5   :  { %s34_s25 = sshll.u32 %s1002_s24, 4  ;;  %s1003_s29 = smov [#allocation8]   ;;  %s35_s25 = int_to_ptr.vmem [resolvable:$true] %s34_s25 }
   0x6   :  { %37 = dma.hbm_to_vmem [thread:$0]  %s33_s23, 128, %s35_s25, [#allocation6]  }
   0x7   :  { %s57_s30 = sshll.u32 %s1003_s29, 4  ;;  %s21_s9 = sshll.u32 %s1177_s0, 4  ;;  %s58_s30 = int_to_ptr.vmem [resolvable:$true] %s57_s30  ;;  %s22_s9 = int_to_ptr.hbm [resolvable:$true] %s21_s9 }
   0x8   :  { %s1004_s1 = smov 64   ;;  %s1005_s10 = smov 4  }
   0x9   :  { %63 = dma.hbm_to_vmem [thread:$0]  %s56_s28, 1024, %s58_s30, [#allocation9], %s1004_s1, %s1004_s1, %s1005_s10  }
   0xa   :  { %s42_s13 = sshll.u32 %s1179_s2, 4  ;;  %s1006_s14 = smov [#allocation2]   ;;  %s43_s13 = int_to_ptr.hbm [resolvable:$true] %s42_s13 }
   0xb   :  { %s23_s15 = sshll.u32 %s1006_s14, 4  ;;  %s1007_s3 = smov [#allocation7]   ;;  %s24_s15 = int_to_ptr.vmem [resolvable:$true] %s23_s15 }
   0xc   :  { %26 = dma.hbm_to_vmem [thread:$0]  %s22_s9, 128, %s24_s15, [#allocation3]  }
   0xd   :  { %s44_s16 = sshll.u32 %s1007_s3, 4  ;;  %s68_s0 = sshll.u32 %s1181_s4, 4  ;;  %s45_s16 = int_to_ptr.vmem [resolvable:$true] %s44_s16  ;;  %s69_s0 = int_to_ptr.hbm [resolvable:$true] %s68_s0 }
   0xe   :  { %50 = dma.hbm_to_vmem [thread:$0]  %s43_s13, 1024, %s45_s16, [#allocation6], %s1004_s1, %s1004_s1, %s1005_s10  }
   0xf   :  { %s82_s21 = sshll.u32 %s1182_s5, 4  ;;  %s1008_s22 = smov [#allocation10]   ;;  %s83_s21 = int_to_ptr.hbm [resolvable:$true] %s82_s21 }
  0x10   :  { %s70_s2 = sshll.u32 %s1008_s22, 4  ;;  %s1009_s23 = smov [#allocation11]   ;;  %s71_s2 = int_to_ptr.vmem [resolvable:$true] %s70_s2 }
  0x11   :  { %76 = dma.hbm_to_vmem [thread:$0]  %s69_s0, 1024, %s71_s2, [#allocation9], %s1004_s1, %s1004_s1, %s1005_s10  }
  0x12   :  { %s84_s24 = sshll.u32 %s1009_s23, 4  ;;  %s85_s24 = int_to_ptr.vmem [resolvable:$true] %s84_s24 }
  0x13   :  { %87 = dma.hbm_to_vmem [thread:$0]  %s83_s21, 128, %s85_s24, [#allocation12]  }
  0x14   :  { %992 = dma.done.wait [#allocation3], 128  }
  0x15   :  { %993 = vsyncadd [#allocation3], 4294967168 }
  0x16   :  { %994 = dma.done.wait [#allocation6], 1152  }
  0x17   :  { %995 = vsyncadd [#allocation6], 4294966144 }
  0x18   :  { %996 = dma.done.wait [#allocation9], 2048  }
  0x19   :  { %997 = vsyncadd [#allocation9], 4294965248 }
  0x1a   :  { %998 = dma.done.wait [#allocation12], 128  }
  0x1b   :  { %999 = vsyncadd [#allocation12], 4294967168  ;;  %v1010_v0 = vmov 0   ;;  %v1011_v1 = vmov 2   ;;  %v1012_v2 = vmov 4   ;;  %v113_v3 = vld [vmem:[#allocation5] sm:$0xff] }
  0x1c   :  { %797 = vset.pattern.permute.xlu0 %v1010_v0  ;;  %799 = vset.pattern.permute.xlu1 %v1011_v1  ;;  %v1013_v4 = vmov 1   ;;  %v1014_v5 = vmov 3   ;;  %v1015_v6 = vmov 5   ;;  %v1016_v7 = vmov 6   ;;  %v1072_v9 = vld [vmem:[#allocation7 + $0x38] sm:$0xff]  ;;  %v1076_v11 = vld [vmem:[#allocation7 + $0x30] sm:$0xff] }
  0x1d   :  { %801 = vset.pattern.permute.xlu2 %v1012_v2  ;;  %165 = vperm.xlu0 %797, %v113_v3   ;;  %v1017_v8 = vmov 7   ;;  %v779_v10 = vld [vmem:[#allocation10 + $0x38] sm:$0xff]  ;;  %v1078_v12 = vld [vmem:[#allocation10 + $0x30] sm:$0xff]  ;;  %v1083_v13 = vld [vmem:[#allocation7 + $0x28] sm:$0xff]  ;;  %vm230_vm0 = vcmask 1043456   ;;  %s1018_s4 = smov [#allocation13]  }
  0x1e   :  { %179 = vperm.xlu1 %799, %v113_v3   ;;  %193 = vperm.xlu2 %801, %v113_v3   ;;  %v1085_v14 = vld [vmem:[#allocation10 + $0x28] sm:$0xff]  ;;  %v1092_v16 = vld [vmem:[#allocation7 + $0x20] sm:$0xff]  ;;  %v1103_v20 = vld [vmem:[#allocation7 + $0x18] sm:$0xff]  ;;  %s645_s5 = sshll.u32 %s1018_s4, 4  ;;  %s647_s27 = sshll.u32 %s1183_s6, 4  ;;  %s646_s5 = int_to_ptr.vmem [resolvable:$true] %s645_s5  ;;  %s648_s27 = int_to_ptr.hbm [resolvable:$true] %s647_s27 }
  0x1f   :  { %283 = vmatpush.bf16.msra.mxu0 %v1072_v9  ;;  %347 = vmatpush.bf16.msra.mxu1 %v779_v10  ;;  %v1094_v17 = vld [vmem:[#allocation10 + $0x20] sm:$0xff]  ;;  %v775_v21 = vld [vmem:[#allocation10 + $0x18] sm:$0xff]  ;;  %v112_v22 = vld [vmem:[#allocation2] sm:$0xff] }
  0x20   :  { %492 = vmatpush.bf16.msra.mxu3 %v1072_v9  ;;  %v1106_v23 = vld [vmem:[#allocation7 + $0x10] sm:$0xff]  ;;  %v168_v25 = vperm.slane %v112_v22, 0  ;;  %v175_v26 = vperm.slane %v112_v22, 1  ;;  %v1112_v28 = vld [vmem:[#allocation7 + $0x8] sm:$0xff]  ;;  %v182_v30 = vperm.slane %v112_v22, 2  ;;  %v189_v35 = vperm.slane %v112_v22, 3 }
  0x21   :  { %v774_v24 = vld [vmem:[#allocation10 + $0x10] sm:$0xff]  ;;  %v773_v29 = vld [vmem:[#allocation10 + $0x8] sm:$0xff]  ;;  %v1122_v36 = vld [vmem:[#allocation7] sm:$0xff]  ;;  %v196_v39 = vperm.slane %v112_v22, 4  ;;  %v203_v43 = vperm.slane %v112_v22, 5  ;;  %v210_v44 = vperm.slane %v112_v22, 6 }
  0x22   :  { %v772_v37 = vld [vmem:[#allocation10] sm:$0xff]  ;;  %v217_v47 = vperm.slane %v112_v22, 7  ;;  %v771_v52 = vld [vmem:[#allocation8 + $0x38] sm:$0xff]  ;;  %v770_v56 = vld [vmem:[#allocation8 + $0x30] sm:$0xff] }
  0x23   :  { %284 = vmatpush.bf16.msra.mxu0 %v1076_v11  ;;  %348 = vmatpush.bf16.msra.mxu1 %v1078_v12 }
  0x24   :  { %493 = vmatpush.bf16.msra.mxu3 %v1076_v11  ;;  %421 = vmatpush.bf16.msra.mxu2 %v771_v52 }
  0x25   :  { %798 = vset.pattern.permute.xlu0 %v1013_v4 }
  0x26   :  { %800 = vset.pattern.permute.xlu1 %v1014_v5  ;;  %172 = vperm.xlu0 %798, %v113_v3   ;;  %v769_v5 = vld [vmem:[#allocation8 + $0x28] sm:$0xff] }
  0x27   :  { %186 = vperm.xlu1 %800, %v113_v3   ;;  %802 = vset.pattern.permute.xlu2 %v1015_v6  ;;  %v768_v6 = vld [vmem:[#allocation8 + $0x20] sm:$0xff] }
  0x28   :  { %200 = vperm.xlu2 %802, %v113_v3   ;;  %285 = vmatpush.bf16.msra.mxu0 %v1083_v13 }
  0x29   :  { %349 = vmatpush.bf16.msra.mxu1 %v1085_v14  ;;  %494 = vmatpush.bf16.msra.mxu3 %v1083_v13 }
  0x2a   :  { %422 = vmatpush.bf16.msra.mxu2 %v770_v56 }
  0x2c   :  { %286 = vmatpush.bf16.msra.mxu0 %v1092_v16 }
  0x2d   :  { %350 = vmatpush.bf16.msra.mxu1 %v1094_v17  ;;  %495 = vmatpush.bf16.msra.mxu3 %v1092_v16 }
  0x2e   :  { %805 = vset.pattern.permute.xlu0 %v1017_v8  ;;  %423 = vmatpush.bf16.msra.mxu2 %v769_v5 }
  0x2f   :  { %803 = vset.pattern.permute.xlu1 %v1016_v7  ;;  %v767_v7 = vld [vmem:[#allocation8 + $0x18] sm:$0xff] }
  0x30   :  { %207 = vperm.xlu1 %803, %v113_v3   ;;  %804 = vset.pattern.permute.xlu2 %v1017_v8  ;;  %v766_v8 = vld [vmem:[#allocation8 + $0x10] sm:$0xff] }
  0x31   :  { %214 = vperm.xlu2 %804, %v113_v3   ;;  %287 = vmatpush.bf16.msra.mxu0 %v1103_v20 }
  0x32   :  { %351 = vmatpush.bf16.msra.mxu1 %v775_v21  ;;  %496 = vmatpush.bf16.msra.mxu3 %v1103_v20 }
  0x33   :  { %424 = vmatpush.bf16.msra.mxu2 %v768_v6 }
  0x35   :  { %288 = vmatpush.bf16.msra.mxu0 %v1106_v23 }
  0x36   :  { %352 = vmatpush.bf16.msra.mxu1 %v774_v24  ;;  %497 = vmatpush.bf16.msra.mxu3 %v1106_v23 }
  0x37   :  { %425 = vmatpush.bf16.msra.mxu2 %v767_v7 }
  0x39   :  { %289 = vmatpush.bf16.msra.mxu0 %v1112_v28 }
  0x3a   :  { %353 = vmatpush.bf16.msra.mxu1 %v773_v29  ;;  %498 = vmatpush.bf16.msra.mxu3 %v1112_v28 }
  0x3b   :  { %426 = vmatpush.bf16.msra.mxu2 %v766_v8 }
  0x3d   :  { %290 = vmatpush.bf16.msra.mxu0 %v1122_v36 }
  0x3e   :  { %354 = vmatpush.bf16.msra.mxu1 %v772_v37  ;;  %499 = vmatpush.bf16.msra.mxu3 %v1122_v36 }
  0x41   :  { %508 = vmatpush.bf16.msrb.mxu0 %v779_v10  ;;  %v765_v10 = vld [vmem:[#allocation8 + $0x8] sm:$0xff] }
  0x42   :  { %534 = vmatpush.bf16.msrb.mxu1 %v771_v52  ;;  %427 = vmatpush.bf16.msra.mxu2 %v765_v10 }
  0x45   :  { %509 = vmatpush.bf16.msrb.mxu0 %v1078_v12  ;;  %v764_v12 = vld [vmem:[#allocation8] sm:$0xff] }
  0x46   :  { %535 = vmatpush.bf16.msrb.mxu1 %v770_v56  ;;  %428 = vmatpush.bf16.msra.mxu2 %v764_v12 }
  0x49   :  { %510 = vmatpush.bf16.msrb.mxu0 %v1085_v14 }
  0x4a   :  { %536 = vmatpush.bf16.msrb.mxu1 %v769_v5  ;;  %605 = vmatpush.bf16.msrb.mxu2 %v1072_v9 }
  0x4d   :  { %511 = vmatpush.bf16.msrb.mxu0 %v1094_v17  ;;  %v1145_v17 = vld [vmem:[#allocation11] sm:$0xff] }
  0x4e   :  { %537 = vmatpush.bf16.msrb.mxu1 %v768_v6  ;;  %606 = vmatpush.bf16.msrb.mxu2 %v1076_v11 }
  0x51   :  { %512 = vmatpush.bf16.msrb.mxu0 %v775_v21 }
  0x52   :  { %538 = vmatpush.bf16.msrb.mxu1 %v767_v7  ;;  %607 = vmatpush.bf16.msrb.mxu2 %v1083_v13 }
  0x55   :  { %513 = vmatpush.bf16.msrb.mxu0 %v774_v24 }
  0x56   :  { %539 = vmatpush.bf16.msrb.mxu1 %v766_v8  ;;  %608 = vmatpush.bf16.msrb.mxu2 %v1092_v16 }
  0x59   :  { %514 = vmatpush.bf16.msrb.mxu0 %v773_v29 }
  0x5a   :  { %540 = vmatpush.bf16.msrb.mxu1 %v765_v10  ;;  %609 = vmatpush.bf16.msrb.mxu2 %v1103_v20 }
  0x5d   :  { %515 = vmatpush.bf16.msrb.mxu0 %v772_v37 }
  0x5e   :  { %541 = vmatpush.bf16.msrb.mxu1 %v764_v12  ;;  %610 = vmatpush.bf16.msrb.mxu2 %v1106_v23 }
  0x62   :  { %611 = vmatpush.bf16.msrb.mxu2 %v1112_v28 }
  0x66   :  { %612 = vmatpush.bf16.msrb.mxu2 %v1122_v36 }
  0x78   :  { %v1090_v15 = vpop.permute.xlu2 %193 }
  0x79   :  { %v197_v45 = vmul.f32 %v196_v39, %v1090_v15 }
  0x82   :  { %v1109_v27 = vpop.permute.xlu2 %200 }
  0x83   :  { %v204_v50 = vmul.f32 %v203_v43, %v1109_v27 }
  0x8b   :  { %v1130_v48 = vpop.permute.xlu2 %214 }
  0x8c   :  { %v218_v55 = vmul.f32 %v217_v47, %v1130_v48 }
  0x8f   :  { %v1098_v18 = vpop.permute.xlu0 %165 }
  0x90   :  { %v1100_v19 = vpop.permute.xlu1 %179  ;;  %v169_v33 = vmul.f32 %v168_v25, %v1098_v18 }
  0x91   :  { %v183_v38 = vmul.f32 %v182_v30, %v1100_v19 }
  0x98   :  { %v1115_v31 = vpop.permute.xlu0 %172 }
  0x99   :  { %v1117_v32 = vpop.permute.xlu1 %186  ;;  %v176_v34 = vmul.f32 %v175_v26, %v1115_v31 }
  0x9a   :  { %v190_v42 = vmul.f32 %v189_v35, %v1117_v32 }
  0x9b   :  { %v177_v40 = vadd.f32 %v176_v34, %v169_v33 }
  0x9d   :  { %v184_v41 = vadd.f32 %v183_v38, %v177_v40 }
  0x9f   :  { %v191_v46 = vadd.f32 %v190_v42, %v184_v41 }
  0xa1   :  { %v198_v49 = vadd.f32 %v197_v45, %v191_v46 }
  0xa2   :  { %v1133_v51 = vpop.permute.xlu1 %207 }
  0xa3   :  { %v211_v53 = vmul.f32 %v210_v44, %v1133_v51  ;;  %v205_v54 = vadd.f32 %v204_v50, %v198_v49 }
  0xa5   :  { %v212_v57 = vadd.f32 %v211_v53, %v205_v54 }
  0xa7   :  { %v219_v58 = vadd.f32 %v218_v55, %v212_v57 }
  0xa9   :  { %v220_v59 = vadd.f32 1e-06, %v219_v58 }
  0xab   :  { %806 = vlog2.f32 %v220_v59 }
  0xb1   :  { %v807_v60 = vpop.eup %806 }
  0xb2   :  { %v222_v61 = vmul.f32 0.6931472, %v807_v60 }
  0xb4   :  { %v223_v62 = vpack.c.bf16 %v222_v61, %v222_v61 }
  0xb6   :  { %v224_v63 = vunpack.c.l.bf16 %v223_v62 }
  0xb8   :  { %v225_v0 = vsub.f32 %v222_v61, %v224_v63 }
  0xba   :  { %v226_v1 = vpack.c.bf16 %v225_v0, %v225_v0 }
  0xbc   :  { %v228_v2 = vunpack.c.l.b16 %v226_v1 }
  0xbe   :  { %v229_v3 = vpack.c.b16 %v228_v2, %v228_v2 }
  0xc0   :  { %v233_v4 = vsel %vm230_vm0, %v223_v62, %v229_v3 }
  0xc1   :  { %291 = vmatmul.bf16.vlgmr.msra.gmra.mxu0 %v233_v4  ;;  %355 = vmatmul.bf16.vlgmr.msra.gmra.mxu1 %v233_v4 }
 0x13e   :  { %v292_v14 = vpop.f32.mrf.mxu0  ;;  %v356_v30 = vpop.f32.mrf.mxu1 }
 0x146   :  { %v294_v21 = vpop.f32.mrf.mxu0  ;;  %v358_v33 = vpop.f32.mrf.mxu1 }
 0x147   :  { %v297_v22 = vadd.f32 %v294_v21, %v292_v14  ;;  %v361_v35 = vadd.f32 %v358_v33, %v356_v30 }
 0x149   :  { %v298_v24 = vadd.f32 %v297_v22, %v1145_v17 }
 0x14b   :  { %v362_v25 = vpack.c.bf16 %v298_v24, %v298_v24 }
 0x14d   :  { %v363_v26 = vunpack.c.l.bf16 %v362_v25 }
 0x14f   :  { %v364_v9 = vsub.f32 %v298_v24, %v363_v26 }
 0x151   :  { %v365_v11 = vpack.c.bf16 %v364_v9, %v364_v9 }
 0x153   :  { %v367_v13 = vunpack.c.l.b16 %v365_v11 }
 0x155   :  { %v368_v16 = vpack.c.b16 %v367_v13, %v367_v13 }
 0x157   :  { %v371_v29 = vsel %vm230_vm0, %v362_v25, %v368_v16 }
 0x158   :  { %429 = vmatmul.bf16.vlgmr.msra.gmra.mxu2 %v371_v29 }
 0x1db   :  { %v430_v20 = vpop.f32.mrf.mxu2 }
 0x1e3   :  { %v432_v34 = vpop.f32.mrf.mxu2 }
 0x1e4   :  { %v435_v37 = vadd.f32 %v432_v34, %v430_v20 }
 0x1e6   :  { %v436_v23 = vsub.f32 %v435_v37, %v361_v35 }
 0x1e8   :  { %v437_v38 = vrot.slane %v436_v23, 4 }
 0x1ea   :  { %v438_v39 = vmax.f32 %v436_v23, %v437_v38 }
 0x1ec   :  { %v439_v40 = vrot.slane %v438_v39, 2 }
 0x1ee   :  { %v440_v28 = vmax.f32 %v438_v39, %v439_v40 }
 0x1f0   :  { %v441_v41 = vrot.slane %v440_v28, 1 }
 0x1f2   :  { %v442_v42 = vmax.f32 %v440_v28, %v441_v41 }
 0x1f4   :  { %v443_v43 = vsub.f32 %v436_v23, %v442_v42 }
 0x1f6   :  { %v444_v36 = vmul.f32 1.442695, %v443_v43 }
 0x1f8   :  { %808 = vpow2.f32 %v444_v36 }
 0x1fe   :  { %v809_v44 = vpop.eup %808 }
 0x1ff   :  { %v446_v45 = vrot.slane %v809_v44, 4 }
 0x201   :  { %v447_v46 = vadd.f32 %v809_v44, %v446_v45 }
 0x203   :  { %v448_v47 = vrot.slane %v447_v46, 2 }
 0x205   :  { %v449_v49 = vadd.f32 %v448_v47, %v447_v46 }
 0x207   :  { %v450_v50 = vrot.slane %v449_v49, 1 }
 0x209   :  { %v451_v52 = vadd.f32 %v450_v50, %v449_v49 }
 0x20b   :  { %810 = vrcp.f32 %v451_v52 }
 0x211   :  { %v811_v53 = vpop.eup %810 }
 0x212   :  { %v453_v54 = vmul.f32 %v811_v53, %v809_v44 }
 0x214   :  { %v454_v55 = vperm.slane %v453_v54, 0  ;;  %v457_v56 = vperm.slane %v453_v54, 1  ;;  %v460_v57 = vperm.slane %v453_v54, 2  ;;  %v463_v60 = vperm.slane %v453_v54, 3 }
 0x215   :  { %v466_v63 = vperm.slane %v453_v54, 4  ;;  %v469_v2 = vperm.slane %v453_v54, 5  ;;  %v472_v5 = vperm.slane %v453_v54, 6  ;;  %v475_v8 = vperm.slane %v453_v54, 7 }
 0x216   :  { %v455_v58 = vmul.f32 %v454_v55, %v1098_v18  ;;  %v458_v59 = vmul.f32 %v457_v56, %v1115_v31  ;;  %v461_v62 = vmul.f32 %v460_v57, %v1100_v19  ;;  %v464_v1 = vmul.f32 %v463_v60, %v1117_v32 }
 0x217   :  { %v467_v4 = vmul.f32 %v466_v63, %v1090_v15  ;;  %v470_v7 = vmul.f32 %v469_v2, %v1109_v27  ;;  %v473_v12 = vmul.f32 %v472_v5, %v1133_v51  ;;  %v476_v21 = vmul.f32 %v475_v8, %v1130_v48 }
 0x218   :  { %v459_v61 = vadd.f32 %v458_v59, %v455_v58 }
 0x21a   :  { %v462_v0 = vadd.f32 %v461_v62, %v459_v61 }
 0x21c   :  { %v465_v3 = vadd.f32 %v464_v1, %v462_v0 }
 0x21e   :  { %v468_v6 = vadd.f32 %v467_v4, %v465_v3 }
 0x220   :  { %v471_v10 = vadd.f32 %v470_v7, %v468_v6 }
 0x222   :  { %v474_v14 = vadd.f32 %v473_v12, %v471_v10 }
 0x224   :  { %v477_v22 = vadd.f32 %v476_v21, %v474_v14 }
 0x226   :  { %v478_v24 = vadd.f32 1e-06, %v477_v22 }
 0x228   :  { %812 = vlog2.f32 %v478_v24 }
 0x22e   :  { %v813_v25 = vpop.eup %812 }
 0x22f   :  { %v480_v26 = vmul.f32 0.6931472, %v813_v25 }
 0x231   :  { %v481_v9 = vpack.c.bf16 %v480_v26, %v480_v26 }
 0x233   :  { %v482_v11 = vunpack.c.l.bf16 %v481_v9 }
 0x235   :  { %v483_v13 = vsub.f32 %v480_v26, %v482_v11 }
 0x237   :  { %v484_v16 = vpack.c.bf16 %v483_v13, %v483_v13 }
 0x239   :  { %v486_v29 = vunpack.c.l.b16 %v484_v16 }
 0x23b   :  { %v487_v30 = vpack.c.b16 %v486_v29, %v486_v29 }
 0x23d   :  { %v490_v20 = vsel %vm230_vm0, %v481_v9, %v487_v30 }
 0x23e   :  { %500 = vmatmul.bf16.vlgmr.msra.gmra.mxu3 %v490_v20  ;;  %516 = vmatmul.bf16.vlgmr.msrb.gmra.mxu0 %v490_v20 }
 0x2bb   :  { %v517_v43 = vpop.f32.mrf.mxu0 }
 0x2c1   :  { %v501_v33 = vpop.f32.mrf.mxu3 }
 0x2c3   :  { %v519_v44 = vpop.f32.mrf.mxu0 }
 0x2c4   :  { %v522_v46 = vadd.f32 %v519_v44, %v517_v43 }
 0x2c9   :  { %v503_v34 = vpop.f32.mrf.mxu3 }
 0x2ca   :  { %v506_v35 = vadd.f32 %v503_v34, %v501_v33 }
 0x2cc   :  { %v507_v37 = vadd.f32 %v506_v35, %v1145_v17 }
 0x2ce   :  { %v523_v23 = vpack.c.bf16 %v507_v37, %v507_v37 }
 0x2d0   :  { %v524_v38 = vunpack.c.l.bf16 %v523_v23 }
 0x2d2   :  { %v525_v39 = vsub.f32 %v507_v37, %v524_v38 }
 0x2d4   :  { %v526_v40 = vpack.c.bf16 %v525_v39, %v525_v39 }
 0x2d6   :  { %v528_v28 = vunpack.c.l.b16 %v526_v40 }
 0x2d8   :  { %v529_v41 = vpack.c.b16 %v528_v28, %v528_v28 }
 0x2da   :  { %v532_v42 = vsel %vm230_vm0, %v523_v23, %v529_v41 }
 0x2db   :  { %542 = vmatmul.bf16.vlgmr.msrb.gmra.mxu1 %v532_v42 }
 0x358   :  { %v543_v36 = vpop.f32.mrf.mxu1 }
 0x360   :  { %v545_v45 = vpop.f32.mrf.mxu1 }
 0x361   :  { %v548_v47 = vadd.f32 %v545_v45, %v543_v36 }
 0x363   :  { %v549_v49 = vsub.f32 %v548_v47, %v522_v46 }
 0x365   :  { %v550_v50 = vrot.slane %v549_v49, 4 }
 0x367   :  { %v551_v52 = vmax.f32 %v549_v49, %v550_v50 }
 0x369   :  { %v552_v53 = vrot.slane %v551_v52, 2 }
 0x36b   :  { %v553_v54 = vmax.f32 %v551_v52, %v552_v53 }
 0x36d   :  { %v554_v55 = vrot.slane %v553_v54, 1 }
 0x36f   :  { %v555_v56 = vmax.f32 %v553_v54, %v554_v55 }
 0x371   :  { %v556_v57 = vsub.f32 %v549_v49, %v555_v56 }
 0x373   :  { %v557_v58 = vmul.f32 1.442695, %v556_v57 }
 0x375   :  { %814 = vpow2.f32 %v557_v58 }
 0x37b   :  { %v815_v59 = vpop.eup %814 }
 0x37c   :  { %v559_v60 = vrot.slane %v815_v59, 4 }
 0x37e   :  { %v560_v61 = vadd.f32 %v815_v59, %v559_v60 }
 0x380   :  { %v561_v62 = vrot.slane %v560_v61, 2 }
 0x382   :  { %v562_v63 = vadd.f32 %v561_v62, %v560_v61 }
 0x384   :  { %v563_v0 = vrot.slane %v562_v63, 1 }
 0x386   :  { %v564_v1 = vadd.f32 %v563_v0, %v562_v63 }
 0x388   :  { %816 = vrcp.f32 %v564_v1 }
 0x38e   :  { %v817_v2 = vpop.eup %816 }
 0x38f   :  { %v566_v3 = vmul.f32 %v817_v2, %v815_v59 }
 0x391   :  { %v567_v4 = vperm.slane %v566_v3, 0  ;;  %v570_v5 = vperm.slane %v566_v3, 1  ;;  %v573_v6 = vperm.slane %v566_v3, 2  ;;  %v576_v10 = vperm.slane %v566_v3, 3 }
 0x392   :  { %v579_v21 = vperm.slane %v566_v3, 4  ;;  %v582_v25 = vperm.slane %v566_v3, 5  ;;  %v585_v11 = vperm.slane %v566_v3, 6  ;;  %v588_v29 = vperm.slane %v566_v3, 7 }
 0x393   :  { %v568_v7 = vmul.f32 %v567_v4, %v1098_v18  ;;  %v571_v8 = vmul.f32 %v570_v5, %v1115_v31  ;;  %v574_v14 = vmul.f32 %v573_v6, %v1100_v19  ;;  %v577_v24 = vmul.f32 %v576_v10, %v1117_v32 }
 0x394   :  { %v580_v9 = vmul.f32 %v579_v21, %v1090_v15  ;;  %v583_v16 = vmul.f32 %v582_v25, %v1109_v27  ;;  %v586_v31 = vmul.f32 %v585_v11, %v1133_v51  ;;  %v589_v20 = vmul.f32 %v588_v29, %v1130_v48 }
 0x395   :  { %v572_v12 = vadd.f32 %v571_v8, %v568_v7 }
 0x397   :  { %v575_v22 = vadd.f32 %v574_v14, %v572_v12 }
 0x399   :  { %v578_v26 = vadd.f32 %v577_v24, %v575_v22 }
 0x39b   :  { %v581_v13 = vadd.f32 %v580_v9, %v578_v26 }
 0x39d   :  { %v584_v18 = vadd.f32 %v583_v16, %v581_v13 }
 0x39f   :  { %v587_v30 = vadd.f32 %v586_v31, %v584_v18 }
 0x3a1   :  { %v590_v19 = vadd.f32 %v589_v20, %v587_v30 }
 0x3a3   :  { %v591_v33 = vadd.f32 1e-06, %v590_v19 }
 0x3a5   :  { %818 = vlog2.f32 %v591_v33 }
 0x3ab   :  { %v819_v34 = vpop.eup %818 }
 0x3ac   :  { %v593_v32 = vmul.f32 0.6931472, %v819_v34 }
 0x3ae   :  { %v594_v35 = vpack.c.bf16 %v593_v32, %v593_v32 }
 0x3b0   :  { %v595_v37 = vunpack.c.l.bf16 %v594_v35 }
 0x3b2   :  { %v596_v23 = vsub.f32 %v593_v32, %v595_v37 }
 0x3b4   :  { %v597_v15 = vpack.c.bf16 %v596_v23, %v596_v23 }
 0x3b6   :  { %v599_v38 = vunpack.c.l.b16 %v597_v15 }
 0x3b8   :  { %v600_v39 = vpack.c.b16 %v599_v38, %v599_v38 }
 0x3ba   :  { %v603_v27 = vsel %vm230_vm0, %v594_v35, %v600_v39 }
 0x3bb   :  { %613 = vmatmul.bf16.vlgmr.msrb.gmra.mxu2 %v603_v27 }
 0x43e   :  { %v614_v40 = vpop.f32.mrf.mxu2 }
 0x446   :  { %v616_v28 = vpop.f32.mrf.mxu2 }
 0x447   :  { %v619_v51 = vadd.f32 %v616_v28, %v614_v40 }
 0x449   :  { %v620_v41 = vadd.f32 %v619_v51, %v1145_v17 }
 0x44b   :  { %v621_v48 = vrot.slane %v620_v41, 4 }
 0x44d   :  { %v622_v42 = vmax.f32 %v620_v41, %v621_v48 }
 0x44f   :  { %v623_v43 = vrot.slane %v622_v42, 2 }
 0x451   :  { %v624_v36 = vmax.f32 %v622_v42, %v623_v43 }
 0x453   :  { %v625_v44 = vrot.slane %v624_v36, 1 }
 0x455   :  { %v626_v45 = vmax.f32 %v624_v36, %v625_v44 }
 0x457   :  { %v627_v46 = vsub.f32 %v620_v41, %v626_v45 }
 0x459   :  { %v628_v47 = vmul.f32 1.442695, %v627_v46 }
 0x45b   :  { %820 = vpow2.f32 %v628_v47 }
 0x461   :  { %v821_v49 = vpop.eup %820 }
 0x462   :  { %v630_v50 = vrot.slane %v821_v49, 4 }
 0x464   :  { %v631_v52 = vadd.f32 %v821_v49, %v630_v50 }
 0x466   :  { %v632_v53 = vrot.slane %v631_v52, 2 }
 0x468   :  { %v633_v54 = vadd.f32 %v632_v53, %v631_v52 }
 0x46a   :  { %v634_v55 = vrot.slane %v633_v54, 1 }
 0x46c   :  { %v635_v56 = vadd.f32 %v634_v55, %v633_v54 }
 0x46e   :  { %822 = vlog2.f32 %v635_v56 }
 0x474   :  { %v823_v57 = vpop.eup %822 }
 0x475   :  { %v637_v17 = vmul.f32 0.6931472, %v823_v57 }
 0x477   :  { %v638_v58 = vsub.f32 %v627_v46, %v637_v17 }
 0x479   :  { %639 = vst [vmem:[#allocation13] sm:$0xff] %v638_v58 }
 0x47a   :  { %650 = dma.vmem_to_hbm [thread:$0]  %s646_s5, 128, %s648_s27, [#allocation4]  }
 0x47b   :  { %1000 = dma.done.wait [#allocation4], 128  }
 0x47c   :  { %1001 = vsyncadd [#allocation4], 4294967168 }
 0x47d   :  { %655 = vsyncpa [#allocation3], 1 }
 0x47e   :  { %656 = vsyncpa [#allocation6], 1 }
 0x47f   :  { %657 = vsyncpa [#allocation9], 1 }
 0x480   :  { %658 = vsyncpa [#allocation12], 1 }
 0x481   :  { %659 = vsyncpa [#allocation4], 1 }

</bundles_post_ra>
